<compile_context>
chip_gen: v7x
topology: tpu7x:2x2x1
jax: 0.10.0
libtpu: 0.0.40
codegen_flags: <defaults>
</compile_context>

<pallas_src>
import functools
import math

import jax
import jax.numpy as jnp
from jax.experimental import pallas as pl
from jax.experimental.pallas import tpu as pltpu

_LOG_EPS = math.log(1e-10)   # reference computes log(p_t + 1e-10)


def _focal_loss_kernel(x_ref, t_ref, a_ref, out_ref, *, gamma, hw, st,
                       needs_mask):
    # x_ref: (1, C, St, 128) logits block  (spatial on sublanes x lanes)
    # t_ref: (1, 1, St, 128) int32 targets
    # a_ref: (C,) per-class alpha scalars in SMEM
    num_class = x_ref.shape[1]
    t = t_ref[0, 0]                                        # (St, 128) int32

    # Class-axis max: C-1 elementwise VPU maxes over dense (St, 128) vregs.
    m = x_ref[0, 0].astype(jnp.float32)
    for c in range(1, num_class):
        m = jnp.maximum(m, x_ref[0, c].astype(jnp.float32))

    # Single unrolled pass over classes: accumulate sum(exp) and select the
    # target-class logit / exp / alpha with compare+select (no one-hot,
    # no (C, tile) temporaries, no gather).
    sum_exp = jnp.zeros_like(m)
    exp_t = jnp.zeros_like(m)      # exp(x_target - m)
    logit_t = jnp.zeros_like(m)
    a_sel = jnp.zeros_like(m)
    for c in range(num_class):
        xc = x_ref[0, c].astype(jnp.float32)
        e = jnp.exp(xc - m)
        sum_exp = sum_exp + e
        sel = t == c
        logit_t = jnp.where(sel, xc, logit_t)
        exp_t = jnp.where(sel, e, exp_t)
        a_sel = jnp.where(sel, a_ref[c], a_sel)            # SMEM scalar bcast

    # p_t without a second full exp: reuse exp(x_t - m) and an approx
    # reciprocal (cheap EUP vrcp) + one Newton step (VPU) for f32 accuracy.
    r = pl.reciprocal(sum_exp, approx=True)
    r = r * (2.0 - sum_exp * r)
    pt = exp_t * r

    # log p_t via log-sum-exp, floored like the reference's log(p_t + 1e-10).
    logpt = jnp.maximum(logit_t - m - jnp.log(sum_exp), _LOG_EPS)

    # (1 - pt)^gamma: clamp at 0 (no NaN for fractional gamma); plain
    # multiplies for small integer gamma (no exp/log pair on the EUP).
    w = jnp.maximum(1.0 - pt, 0.0)
    gi = int(gamma)
    if float(gamma) == float(gi) and 0 <= gi <= 8:
        fw = jnp.ones_like(w)
        for _ in range(gi):
            fw = fw * w
    else:
        fw = jnp.power(w, gamma)

    loss = -a_sel * fw * logpt                              # (St, 128)

    if needs_mask:
        # Zero out the padded tail (global flat spatial index >= true hw).
        s_idx = jax.lax.broadcasted_iota(jnp.int32, loss.shape, 0)
        l_idx = jax.lax.broadcasted_iota(jnp.int32, loss.shape, 1)
        flat = (pl.program_id(1) * st + s_idx) * 128 + l_idx
        loss = jnp.where(flat < hw, loss, 0.0)

    out_ref[...] = jnp.sum(loss).reshape(1, 1, 1, 1)


def _cdiv(a, b):
    return -(-a // b)


def _round_up(a, b):
    return _cdiv(a, b) * b


def _choose_spatial_tiling(hw, num_class, n_batch, target_block_bytes):
    """Pick (sublane_tile, num_j_blocks, padded_sublanes) for the (sp, 128)
    spatial layout.  The f32 logits block is ~target_block_bytes; split blocks
    use a multiple of 8 sublanes, a single block may cover the full axis."""
    sp = _cdiv(hw, 128)                       # sublanes needed (128 lanes each)
    st = max(8, ((target_block_bytes // (num_class * 128 * 4)) // 8) * 8)
    # v7x megacore: with a single sample all parallelism is on j, so keep at
    # least 2 spatial blocks when there is enough data to split.
    if n_batch == 1 and sp > 8:
        st = min(st, _round_up(_cdiv(sp, 2), 8))
    if sp <= st:
        return sp, 1, sp                      # one full-extent block, no pad
    nj = _cdiv(sp, st)
    return st, nj, nj * st


def focal_loss(x, target, alpha, *, gamma=2.0, size_average=True,
               target_block_bytes=2 << 20):
    """x: (N, C, ...) or (N, C) float logits; target: int class ids (one per
    non-class element); alpha: per-class weights of shape (C,) or (C, 1)."""
    if x.ndim == 2:
        # Classification path: put the batch on the lane/sublane axes so many
        # samples are processed per block (not 1 lane / grid step per sample).
        n_batch, num_class = 1, x.shape[1]
        hw = x.shape[0]
        x3 = x.T.reshape(1, num_class, hw)     # tiny (N, C) transpose in XLA
        t2 = target.reshape(1, hw)
    else:
        n_batch, num_class = x.shape[0], x.shape[1]
        hw = math.prod(x.shape[2:])
        x3 = x.reshape(n_batch, num_class, hw)              # metadata-only
        t2 = target.reshape(n_batch, hw)

    st, nj, sp_pad = _choose_spatial_tiling(hw, num_class, n_batch,
                                            target_block_bytes)
    hw_pad = sp_pad * 128
    needs_mask = hw_pad != hw
    if needs_mask:
        x3 = jnp.pad(x3, ((0, 0), (0, 0), (0, hw_pad - hw)))
        t2 = jnp.pad(t2, ((0, 0), (0, hw_pad - hw)))

    # Fold the spatial axis onto (sublane, lane): dense vregs for every class.
    x4 = x3.reshape(n_batch, num_class, sp_pad, 128)
    # TODO(synk): store targets as int8 when num_class <= 127 to cut ~15% of
    # HBM traffic; kept int32 here for lowering safety.
    t4 = t2.reshape(n_batch, 1, sp_pad, 128).astype(jnp.int32)
    a1 = alpha.reshape(-1).astype(jnp.float32)              # (C,) -> SMEM

    kernel = functools.partial(_focal_loss_kernel, gamma=float(gamma),
                               hw=hw, st=st, needs_mask=needs_mask)

    partials = pl.pallas_call(
        kernel,
        out_shape=jax.ShapeDtypeStruct((n_batch, nj, 1, 1), jnp.float32),
        grid_spec=pltpu.PrefetchScalarGridSpec(
            num_scalar_prefetch=0,
            grid=(n_batch, nj),
            in_specs=[
                pl.BlockSpec((1, num_class, st, 128),
                             lambda n, j: (n, 0, j, 0)),
                pl.BlockSpec((1, 1, st, 128), lambda n, j: (n, 0, j, 0)),
                pl.BlockSpec(memory_space=pltpu.MemorySpace.SMEM),
            ],
            out_specs=pl.BlockSpec((1, 1, 1, 1), lambda n, j: (n, j, 0, 0)),
        ),
        compiler_params=pltpu.CompilerParams(
            dimension_semantics=("parallel", "parallel"),
            vmem_limit_bytes=32 * 1024 * 1024),
    )(x4, t4, a1)

    total = jnp.sum(partials)
    if size_average:
        # Mean over the true (unpadded) element count; with alpha == ones this
        # is value-equivalent to the PyTorch module's mean (its alpha
        # broadcast quirk averages out to a per-element mean there).
        return total / float(n_batch * hw)
    return total


def _reference_focal_loss(x, target, alpha, gamma=2.0, size_average=True):
    N, C = x.shape[0], x.shape[1]
    p = jax.nn.softmax(x, axis=1)
    p = p.reshape(N, C, -1).transpose(0, 2, 1).reshape(-1, C)
    t = target.reshape(-1)
    one_hot = jax.nn.one_hot(t, C, dtype=jnp.float32)
    pt = jnp.sum(one_hot * p, axis=1) + 1e-10
    logpt = jnp.log(pt)
    a_row = alpha.reshape(-1)[t]
    loss = -1.0 * a_row * jnp.power(1.0 - pt, gamma) * logpt
    return jnp.mean(loss) if size_average else jnp.sum(loss)


if __name__ == "__main__":
    num_class = 4
    gamma = 2.0
    N, C, H, W = 2, num_class, 16, 16

    key = jax.random.PRNGKey(0)
    kx, kt = jax.random.split(key)
    x = jax.random.normal(kx, (N, C, H, W), dtype=jnp.float32)
    target = jax.random.randint(kt, (N, H, W), 0, num_class, dtype=jnp.int32)

    # self.alpha = torch.ones(num_class, 1) — deterministic ones
    alpha = jnp.ones((num_class, 1), dtype=jnp.float32)

    loss = focal_loss(x, target, alpha, gamma=gamma, size_average=True)
    loss = jax.block_until_ready(loss)

    ref = _reference_focal_loss(x, target, alpha, gamma=gamma,
                                size_average=True)
    assert jnp.allclose(loss, ref, rtol=1e-4, atol=1e-6), (loss, ref)

    print("KERNEL_OK")
</pallas_src>

<mosaic_0001>
module attributes {stable_mosaic.version = 11 : i64} {
  func.func @_focal_loss_kernel(%arg0: i32, %arg1: i32, %arg2: memref<1x4x2x128xf32, #tpu.memory_space<vmem>>, %arg3: memref<1x1x2x128xi32, #tpu.memory_space<vmem>>, %arg4: memref<4xf32, #tpu.memory_space<smem>>, %arg5: memref<1x1x1x1xf32, #tpu.memory_space<vmem>>) attributes {dimension_semantics = [#tpu.dimension_semantics<parallel>, #tpu.dimension_semantics<parallel>], iteration_bounds = array<i64: 2, 1>, scalar_prefetch = 0 : i64, scratch_operands = 0 : i64, tpu.core_type = #tpu.core_type<tc>, window_params = [{transform_indices = @transform_0, window_bounds = array<i64: 1, 4, 2, 128>}, {transform_indices = @transform_1, window_bounds = array<i64: 1, 1, 2, 128>}, {transform_indices = @transform_2, window_bounds = array<i64: 4>}, {transform_indices = @transform_3, window_bounds = array<i64: 1, 1, 1, 1>}]} {
    %c0 = arith.constant 0 : index
    %c0_0 = arith.constant 0 : index
    %c0_1 = arith.constant 0 : index
    %c0_2 = arith.constant 0 : index
    %0 = vector.load %arg3[%c0, %c0_0, %c0_1, %c0_2] : memref<1x1x2x128xi32, #tpu.memory_space<vmem>>, vector<1x1x2x128xi32>
    %1 = vector.shape_cast %0 : vector<1x1x2x128xi32> to vector<2x128xi32>
    %c0_3 = arith.constant 0 : index
    %c0_4 = arith.constant 0 : index
    %c0_5 = arith.constant 0 : index
    %c0_6 = arith.constant 0 : index
    %2 = vector.load %arg2[%c0_3, %c0_4, %c0_5, %c0_6] : memref<1x4x2x128xf32, #tpu.memory_space<vmem>>, vector<1x1x2x128xf32>
    %3 = vector.shape_cast %2 : vector<1x1x2x128xf32> to vector<2x128xf32>
    %c0_7 = arith.constant 0 : index
    %c1 = arith.constant 1 : index
    %c0_8 = arith.constant 0 : index
    %c0_9 = arith.constant 0 : index
    %4 = vector.load %arg2[%c0_7, %c1, %c0_8, %c0_9] : memref<1x4x2x128xf32, #tpu.memory_space<vmem>>, vector<1x1x2x128xf32>
    %5 = vector.shape_cast %4 : vector<1x1x2x128xf32> to vector<2x128xf32>
    %6 = arith.maximumf %3, %5 : vector<2x128xf32>
    %c0_10 = arith.constant 0 : index
    %c2 = arith.constant 2 : index
    %c0_11 = arith.constant 0 : index
    %c0_12 = arith.constant 0 : index
    %7 = vector.load %arg2[%c0_10, %c2, %c0_11, %c0_12] : memref<1x4x2x128xf32, #tpu.memory_space<vmem>>, vector<1x1x2x128xf32>
    %8 = vector.shape_cast %7 : vector<1x1x2x128xf32> to vector<2x128xf32>
    %9 = arith.maximumf %6, %8 : vector<2x128xf32>
    %c0_13 = arith.constant 0 : index
    %c3 = arith.constant 3 : index
    %c0_14 = arith.constant 0 : index
    %c0_15 = arith.constant 0 : index
    %10 = vector.load %arg2[%c0_13, %c3, %c0_14, %c0_15] : memref<1x4x2x128xf32, #tpu.memory_space<vmem>>, vector<1x1x2x128xf32>
    %11 = vector.shape_cast %10 : vector<1x1x2x128xf32> to vector<2x128xf32>
    %12 = arith.maximumf %9, %11 : vector<2x128xf32>
    %cst = arith.constant 0.000000e+00 : f32
    %13 = vector.broadcast %cst : f32 to vector<2x128xf32>
    %cst_16 = arith.constant 0.000000e+00 : f32
    %14 = vector.broadcast %cst_16 : f32 to vector<2x128xf32>
    %cst_17 = arith.constant 0.000000e+00 : f32
    %15 = vector.broadcast %cst_17 : f32 to vector<2x128xf32>
    %cst_18 = arith.constant 0.000000e+00 : f32
    %16 = vector.broadcast %cst_18 : f32 to vector<2x128xf32>
    %c0_19 = arith.constant 0 : index
    %c0_20 = arith.constant 0 : index
    %c0_21 = arith.constant 0 : index
    %c0_22 = arith.constant 0 : index
    %17 = vector.load %arg2[%c0_19, %c0_20, %c0_21, %c0_22] : memref<1x4x2x128xf32, #tpu.memory_space<vmem>>, vector<1x1x2x128xf32>
    %18 = vector.shape_cast %17 : vector<1x1x2x128xf32> to vector<2x128xf32>
    %19 = arith.subf %18, %12 : vector<2x128xf32>
    %20 = math.exp %19 : vector<2x128xf32>
    %21 = arith.addf %13, %20 : vector<2x128xf32>
    %c0_i32 = arith.constant 0 : i32
    %22 = vector.broadcast %c0_i32 : i32 to vector<2x128xi32>
    %23 = arith.cmpi eq, %1, %22 : vector<2x128xi32>
    %24 = arith.select %23, %18, %15 : vector<2x128xi1>, vector<2x128xf32>
    %25 = arith.select %23, %20, %14 : vector<2x128xi1>, vector<2x128xf32>
    %c0_23 = arith.constant 0 : index
    %26 = memref.load %arg4[%c0_23] : memref<4xf32, #tpu.memory_space<smem>>
    %27 = vector.broadcast %26 : f32 to vector<2x128xf32>
    %28 = arith.select %23, %27, %16 : vector<2x128xi1>, vector<2x128xf32>
    %c0_24 = arith.constant 0 : index
    %c1_25 = arith.constant 1 : index
    %c0_26 = arith.constant 0 : index
    %c0_27 = arith.constant 0 : index
    %29 = vector.load %arg2[%c0_24, %c1_25, %c0_26, %c0_27] : memref<1x4x2x128xf32, #tpu.memory_space<vmem>>, vector<1x1x2x128xf32>
    %30 = vector.shape_cast %29 : vector<1x1x2x128xf32> to vector<2x128xf32>
    %31 = arith.subf %30, %12 : vector<2x128xf32>
    %32 = math.exp %31 : vector<2x128xf32>
    %33 = arith.addf %21, %32 : vector<2x128xf32>
    %c1_i32 = arith.constant 1 : i32
    %34 = vector.broadcast %c1_i32 : i32 to vector<2x128xi32>
    %35 = arith.cmpi eq, %1, %34 : vector<2x128xi32>
    %36 = arith.select %35, %30, %24 : vector<2x128xi1>, vector<2x128xf32>
    %37 = arith.select %35, %32, %25 : vector<2x128xi1>, vector<2x128xf32>
    %c1_28 = arith.constant 1 : index
    %38 = memref.load %arg4[%c1_28] : memref<4xf32, #tpu.memory_space<smem>>
    %39 = vector.broadcast %38 : f32 to vector<2x128xf32>
    %40 = arith.select %35, %39, %28 : vector<2x128xi1>, vector<2x128xf32>
    %c0_29 = arith.constant 0 : index
    %c2_30 = arith.constant 2 : index
    %c0_31 = arith.constant 0 : index
    %c0_32 = arith.constant 0 : index
    %41 = vector.load %arg2[%c0_29, %c2_30, %c0_31, %c0_32] : memref<1x4x2x128xf32, #tpu.memory_space<vmem>>, vector<1x1x2x128xf32>
    %42 = vector.shape_cast %41 : vector<1x1x2x128xf32> to vector<2x128xf32>
    %43 = arith.subf %42, %12 : vector<2x128xf32>
    %44 = math.exp %43 : vector<2x128xf32>
    %45 = arith.addf %33, %44 : vector<2x128xf32>
    %c2_i32 = arith.constant 2 : i32
    %46 = vector.broadcast %c2_i32 : i32 to vector<2x128xi32>
    %47 = arith.cmpi eq, %1, %46 : vector<2x128xi32>
    %48 = arith.select %47, %42, %36 : vector<2x128xi1>, vector<2x128xf32>
    %49 = arith.select %47, %44, %37 : vector<2x128xi1>, vector<2x128xf32>
    %c2_33 = arith.constant 2 : index
    %50 = memref.load %arg4[%c2_33] : memref<4xf32, #tpu.memory_space<smem>>
    %51 = vector.broadcast %50 : f32 to vector<2x128xf32>
    %52 = arith.select %47, %51, %40 : vector<2x128xi1>, vector<2x128xf32>
    %c0_34 = arith.constant 0 : index
    %c3_35 = arith.constant 3 : index
    %c0_36 = arith.constant 0 : index
    %c0_37 = arith.constant 0 : index
    %53 = vector.load %arg2[%c0_34, %c3_35, %c0_36, %c0_37] : memref<1x4x2x128xf32, #tpu.memory_space<vmem>>, vector<1x1x2x128xf32>
    %54 = vector.shape_cast %53 : vector<1x1x2x128xf32> to vector<2x128xf32>
    %55 = arith.subf %54, %12 : vector<2x128xf32>
    %56 = math.exp %55 : vector<2x128xf32>
    %57 = arith.addf %45, %56 : vector<2x128xf32>
    %c3_i32 = arith.constant 3 : i32
    %58 = vector.broadcast %c3_i32 : i32 to vector<2x128xi32>
    %59 = arith.cmpi eq, %1, %58 : vector<2x128xi32>
    %60 = arith.select %59, %54, %48 : vector<2x128xi1>, vector<2x128xf32>
    %61 = arith.select %59, %56, %49 : vector<2x128xi1>, vector<2x128xf32>
    %c3_38 = arith.constant 3 : index
    %62 = memref.load %arg4[%c3_38] : memref<4xf32, #tpu.memory_space<smem>>
    %63 = vector.broadcast %62 : f32 to vector<2x128xf32>
    %64 = arith.select %59, %63, %52 : vector<2x128xi1>, vector<2x128xf32>
    %65 = tpu.reciprocal %57 {approx = true} : vector<2x128xf32> -> vector<2x128xf32>
    %66 = arith.mulf %57, %65 : vector<2x128xf32>
    %cst_39 = arith.constant 2.000000e+00 : f32
    %67 = vector.broadcast %cst_39 : f32 to vector<2x128xf32>
    %68 = arith.subf %67, %66 : vector<2x128xf32>
    %69 = arith.mulf %65, %68 : vector<2x128xf32>
    %70 = arith.mulf %61, %69 : vector<2x128xf32>
    %71 = arith.subf %60, %12 : vector<2x128xf32>
    %72 = math.log %57 : vector<2x128xf32>
    %73 = arith.subf %71, %72 : vector<2x128xf32>
    %cst_40 = arith.constant -23.0258503 : f32
    %74 = vector.broadcast %cst_40 : f32 to vector<2x128xf32>
    %75 = arith.maximumf %73, %74 : vector<2x128xf32>
    %cst_41 = arith.constant 1.000000e+00 : f32
    %76 = vector.broadcast %cst_41 : f32 to vector<2x128xf32>
    %77 = arith.subf %76, %70 : vector<2x128xf32>
    %cst_42 = arith.constant 0.000000e+00 : f32
    %78 = vector.broadcast %cst_42 : f32 to vector<2x128xf32>
    %79 = arith.maximumf %77, %78 : vector<2x128xf32>
    %cst_43 = arith.constant 1.000000e+00 : f32
    %80 = vector.broadcast %cst_43 : f32 to vector<2x128xf32>
    %81 = arith.mulf %80, %79 : vector<2x128xf32>
    %82 = arith.mulf %81, %79 : vector<2x128xf32>
    %cst_44 = arith.constant 0.000000e+00 : f32
    %83 = vector.broadcast %cst_44 : f32 to vector<2x128xf32>
    %84 = arith.subf %83, %64 : vector<2x128xf32>
    %85 = arith.mulf %84, %82 : vector<2x128xf32>
    %86 = arith.mulf %85, %75 : vector<2x128xf32>
    %87 = vector.shape_cast %86 : vector<2x128xf32> to vector<1x2x128xf32>
    %cst_45 = arith.constant dense<0.000000e+00> : vector<1xf32>
    %88 = vector.multi_reduction <add>, %87, %cst_45 [1, 2] : vector<1x2x128xf32> to vector<1xf32>
    %89 = vector.shape_cast %88 : vector<1xf32> to vector<1x1x1xf32>
    %90 = vector.extract %89[0, 0, 0] : f32 from vector<1x1x1xf32>
    %91 = vector.broadcast %90 : f32 to vector<1x1x1x1xf32>
    %c0_46 = arith.constant 0 : index
    %c0_47 = arith.constant 0 : index
    %c0_48 = arith.constant 0 : index
    %c0_49 = arith.constant 0 : index
    %92 = vector.load %arg5[%c0_46, %c0_47, %c0_48, %c0_49] : memref<1x1x1x1xf32, #tpu.memory_space<vmem>>, vector<1x1x1x1xf32>
    tpu.vector_store %arg5[%c0_46, %c0_47, %c0_48, %c0_49], %91 {strides = array<i32>} : memref<1x1x1x1xf32, #tpu.memory_space<vmem>>, vector<1x1x1x1xf32>,
    return
  }
  func.func @transform_0(%arg0: i32, %arg1: i32) -> (i32, i32, i32, i32) {
    %c0_i32 = arith.constant 0 : i32
    %c0_i32_0 = arith.constant 0 : i32
    %c0_i32_1 = arith.constant 0 : i32
    return %arg0, %c0_i32, %arg1, %c0_i32_0 : i32, i32, i32, i32
  }
  func.func @transform_1(%arg0: i32, %arg1: i32) -> (i32, i32, i32, i32) {
    %c0_i32 = arith.constant 0 : i32
    %c0_i32_0 = arith.constant 0 : i32
    %c0_i32_1 = arith.constant 0 : i32
    return %arg0, %c0_i32, %arg1, %c0_i32_0 : i32, i32, i32, i32
  }
  func.func @transform_2(%arg0: i32, %arg1: i32) -> i32 {
    %c0_i32 = arith.constant 0 : i32
    %c0_i32_0 = arith.constant 0 : i32
    return %c0_i32 : i32
  }
  func.func @transform_3(%arg0: i32, %arg1: i32) -> (i32, i32, i32, i32) {
    %c0_i32 = arith.constant 0 : i32
    %c0_i32_0 = arith.constant 0 : i32
    %c0_i32_1 = arith.constant 0 : i32
    return %arg0, %arg1, %c0_i32, %c0_i32_0 : i32, i32, i32, i32
  }
}

</mosaic_0001>

<bundles_post_ra>
// kernel: tpu_custom_call.1
= control target key start
LH: loop header
LB: loop body
LE: loop exit
PB: predicated region body
PF: predicated region fallthrough
CT: control target
= control target key end

     0   :  { %8 = vsyncpa [#allocation3], 0  ;;  %s922_s0 = inlined_call_operand.hbm [shape: f32[2,4,2,128], index: 0, kind: input, shape index: {}]   ;;  %s923_s1 = inlined_call_operand.hbm [shape: s32[2,1,2,128], index: 1, kind: input, shape index: {}]   ;;  %s924_s2 = inlined_call_operand.vmem [shape: f32[4], index: 2, kind: input, shape index: {}]   ;;  %s925_s3 = inlined_call_operand.vmem [shape: f32[2,1,1,1], index: 3, kind: output, shape index: {}]  }
   0x1   :  { %10 = vsyncpa [#allocation3 + $0x1], 0 }
   0x2   :  { %11 = vsyncpa [#allocation6], 0 }
   0x3   :  { %13 = vsyncpa [#allocation6 + $0x1], 0 }
   0x4   :  { %14 = vsyncpa [#allocation4], 0  ;;  %s730_s12 = smov 0   ;;  %s732_s13 = smov 0  }
   0x5   :  { %s734_s14 = smov 0   ;;  %s736_s15 = smov 0  }
   0x6   :  { %s738_s16 = smov 0   ;;  %s740_s17 = smov 0  }
   0x7 LB: > { %s460_s18 = sadd.s32 4294967295, %s703_s17   ;;  %s41_s19 = sadd.s32 1, %s691_s14  ;;  %s703_s17 = sphi %s740_s17, %s20_s17   ;;  %s699_s16 = sphi %s738_s16, %s942_s16   ;;  %s695_s15 = sphi %s736_s15, %s941_s15   ;;  %s691_s14 = sphi %s734_s14, %s940_s14   ;;  %s687_s13 = sphi %s732_s13, %s939_s13   ;;  %s683_s12 = sphi %s730_s12, %s938_s12  }
   0x8   : > { %p48_p0 = scmp.ne.s32.totalorder %s691_s14, %s687_s13  ;;  %p49_p1 = scmp.eq.s32.totalorder %s703_s17, 0 }
   0x9   : > { %p54_p2 = scmp.ne.s32.totalorder %s687_s13, %s683_s12  ;;  %p764_p3 = scmp.eq.s32.totalorder %s460_s18, 0 }
   0xa   : > { %p50_p4 = por %p49_p1, %p48_p0  ;;  %p462_p5 = scmp.ge.s32.totalorder %s703_s17, 1 }
   0xb   : > { %s930_s20 = scalar_select %p764_p3, 1, 0 }
   0xc   : > { %p771_p6 = por %p764_p3, %p54_p2  ;;  %p142_p7 = scmp.lt.s32.totalorder %s703_s17, 3 }
   0xd   : > { %s155_s24 = sshll.u32 %s924_s2, 4  ;;  %p505_p10 = scmp.lt.s32.totalorder %s703_s17, 2  ;;  %s156_s24 = int_to_ptr.vmem [resolvable:$true] %s155_s24 }
   0xe   : > { %s931_s21 = scalar_select %p771_p6, 1, 0 }
   0xf   : > { %p779_p8 = pnand %p462_p5, %p142_p7  ;;  %s787_s26 = sand.u32 1, %s691_s14  }
  0x10   : > { %p791_p12 = pnand %p505_p10, %p50_p4  ;;  %s570_s28 = scalar_lea.vmem %s156_s24, 16 }
  0x11   : > { %s932_s25 = scalar_select %p779_p8, 1, 0 }
  0x12   : > { %p493_p9 = pneg %p779_p8  ;;  %p571_p13 = scmp.ne.s32.totalorder %s156_s24, %s570_s28 }
  0x13   : > { %p578_p5 = scmp.lt.s32.totalorder %s156_s24, %s156_s24  ;;  %p579_p7 = scmp.lt.s32.totalorder %s570_s28, %s570_s28 }
  0x14   : > { %p494_p11 = pnand %p493_p9, %p764_p3 }
  0x15   : > { %p580_p6 = por %p579_p7, %p578_p5 }
  0x16   : > { %p572_p0 = pneg %p494_p11 }
  0x18   : > { %p573_p1 = pnand %p572_p0, %p571_p13 }
  0x1a   : > { %p574_p2 = pneg %p573_p1 }
  0x1c   : > { %p581_p8 = pnand %p580_p6, %p574_p2 }
  0x1e   : > { %584 = shalt.err (!%p581_p8)
}
  0x1f   : > { %s705_s29 = smov [#allocation7]   ;;  %s32_s30 = sadd.s32 1, %s699_s16 }
  0x20   : > { %496 = dma.vmem_to_smem (!%p494_p11), %s156_s24, 16, %s705_s29, [#allocation4]  }
  0x21   : > { %s465_s4 = sshll.u32 %s787_s26, 3  ;;  %p34_p4 = scmp.ge.s32.totalorder %s32_s30, 2 }
  0x22   : > { %s482_s5 = sshll.u32 %s699_s16, 7  ;;  %s170_s6 = scalar_lea.vmem [#allocation2], %s465_s4 }
  0x23   : > { %s178_s7 = sshll.u32 %s170_s6, 4  ;;  %s944_s30 = smov (%p34_p4, %s32_s30), 0  ;;  %s805_s7 = int_to_ptr.vmem [resolvable:$true] %s178_s7 }
  0x24   : > { %s803_s10 = scalar_lea.hbm %s922_s0, %s482_s5  ;;  %s36_s11 = ssub.s32 %s699_s16, %s944_s30 }
  0x25   : > { %p809_p6 = scmp.eq.s32.totalorder %s36_s11, 0  ;;  %s167_s18 = scalar_lea.sflag [#allocation3], %s787_s26 }
  0x26   : > { %s585_s22 = scalar_lea.hbm %s803_s10, 128  ;;  %p587_p9 = pneg %p791_p12 }
  0x27   : > { %p586_p8 = scmp.ne.s32.totalorder %s803_s10, %s585_s22  ;;  %s590_s28 = scalar_lea.hbm %s922_s0, 256 }
  0x28   : > { %p591_p13 = scmp.lt.u32.totalorder %s803_s10, %s922_s0  ;;  %p592_p0 = scmp.lt.u32.totalorder %s590_s28, %s585_s22 }
  0x29   : > { %p588_p10 = pnand %p587_p9, %p586_p8  ;;  %p594_p2 = scmp.lt.u32.totalorder %s585_s22, %s803_s10 }
  0x2a   : > { %p593_p1 = por %p592_p0, %p591_p13 }
  0x2b   : > { %p589_p11 = pneg %p588_p10 }
  0x2c   : > { %p595_p5 = por %p594_p2, %p593_p1 }
  0x2e   : > { %p596_p7 = pnand %p595_p5, %p589_p11 }
  0x30   : > { %599 = shalt.err (!%p596_p7)
}
  0x31   : > { %s600_s5 = scalar_lea.vmem %s805_s7, 128  ;;  %s706_s6 = smov [#allocation2]  }
  0x32   : > { %p601_p4 = scmp.ne.s32.totalorder %s805_s7, %s600_s5  ;;  %s605_s8 = sshll.u32 %s706_s6, 4  ;;  %s606_s8 = int_to_ptr.vmem [resolvable:$false] %s605_s8 }
  0x33   : > { %s607_s9 = scalar_lea.vmem %s606_s8, 256  ;;  %p608_p3 = scmp.lt.s32.totalorder %s805_s7, %s606_s8 }
  0x34   : > { %p603_p8 = pnand %p601_p4, %p587_p9  ;;  %p609_p13 = scmp.lt.s32.totalorder %s607_s9, %s600_s5 }
  0x36   : > { %p604_p10 = pneg %p603_p8  ;;  %p610_p0 = por %p609_p13, %p608_p3 }
  0x38   : > { %p611_p1 = pnand %p610_p0, %p604_p10 }
  0x3a   : > { %614 = shalt.err (!%p611_p1)
}
  0x3b   : > { %s707_s11 = smov 32   ;;  %s708_s22 = smov 2  }
  0x3c   : > { %500 = dma.hbm_to_vmem [thread:$0]  (!%p791_p12), %s803_s10, 128, %s805_s7, %s167_s18, %s707_s11, %s707_s11, %s708_s22  }
  0x3d   : > { %s846_s23 = scalar_select %p809_p6, %s691_s14, %s41_s19  }
  0x3e   : > { %s468_s24 = sshll.u32 %s787_s26, 1  ;;  %s469_s28 = sshll.u32 %s699_s16, 5 }
  0x3f   : > { %s853_s5 = scalar_lea.hbm %s923_s1, %s469_s28  ;;  %s192_s6 = scalar_lea.vmem [#allocation5], %s468_s24 }
  0x40   : > { %s200_s8 = sshll.u32 %s192_s6, 4  ;;  %s189_s9 = scalar_lea.sflag [#allocation6], %s787_s26  ;;  %s201_s8 = int_to_ptr.vmem [resolvable:$true] %s200_s8 }
  0x41   : > { %s615_s7 = scalar_lea.hbm %s853_s5, 32  ;;  %s620_s12 = scalar_lea.hbm %s923_s1, 64 }
  0x42   : > { %p616_p3 = scmp.ne.s32.totalorder %s853_s5, %s615_s7  ;;  %p621_p2 = scmp.lt.u32.totalorder %s853_s5, %s923_s1 }
  0x43   : > { %p622_p5 = scmp.lt.u32.totalorder %s620_s12, %s615_s7  ;;  %p624_p4 = scmp.lt.u32.totalorder %s615_s7, %s853_s5 }
  0x44   : > { %p618_p6 = pnand %p616_p3, %p587_p9 }
  0x45   : > { %p623_p7 = por %p622_p5, %p621_p2 }
  0x46   : > { %p619_p11 = pneg %p618_p6 }
  0x47   : > { %p625_p8 = por %p624_p4, %p623_p7 }
  0x49   : > { %p626_p10 = pnand %p625_p8, %p619_p11 }
  0x4b   : > { %629 = shalt.err (!%p626_p10)
}
  0x4c   : > { %s630_s26 = scalar_lea.vmem %s201_s8, 32  ;;  %s709_s22 = smov [#allocation5]  }
  0x4d   : > { %p631_p13 = scmp.ne.s32.totalorder %s201_s8, %s630_s26  ;;  %s635_s24 = sshll.u32 %s709_s22, 4  ;;  %s636_s24 = int_to_ptr.vmem [resolvable:$false] %s635_s24 }
  0x4e   : > { %s637_s28 = scalar_lea.vmem %s636_s24, 64  ;;  %p638_p3 = scmp.lt.s32.totalorder %s201_s8, %s636_s24 }
  0x4f   : > { %p633_p0 = pnand %p631_p13, %p587_p9  ;;  %p639_p6 = scmp.lt.s32.totalorder %s637_s28, %s630_s26 }
  0x51   : > { %p634_p1 = pneg %p633_p0  ;;  %p640_p2 = por %p639_p6, %p638_p3 }
  0x53   : > { %p641_p5 = pnand %p640_p2, %p634_p1 }
  0x55   : > { %644 = shalt.err (!%p641_p5)
}
  0x56   : > { %503 = dma.hbm_to_vmem [thread:$0]  (!%p791_p12), %s853_s5, 32, %s201_s8, %s189_s9  }
  0x57   : > { %p935_p11 = scmp.ne.s32.totalorder %s932_s25, 0 }
  0x58   : > { %s211_s29 = sand.u32 (!%p935_p11), 1, %s687_s13   ;;  %p936_p9 = scmp.ne.s32.totalorder (!%p935_p11), %s931_s21, 0 }
  0x59   : > { %209 = sbr.rel (%p935_p11) target bundleno = 370 (0x172), region = 32  ;;  %s471_s4 = sshll.u32 (!%p935_p11), %s211_s29, 3 }
  0x5a   : > { %s212_s6 = scalar_lea.sflag (!%p935_p11), [#allocation3], %s211_s29  ;;  %s215_s7 = scalar_lea.vmem (!%p935_p11), [#allocation2], %s471_s4 }
  0x60   : > { %670 = dma.done.wait (%p936_p9), %s212_s6, 128  }
  0x61   : > { %672 = vsyncadd (%p936_p9), %s212_s6, 4294967168  ;;  %s472_s19 = sshll.u32 %s211_s29, 1  ;;  %s221_s10 = scalar_lea.sflag [#allocation6], %s211_s29 }
  0x62   : > { %s882_s27 = scalar_lea.vmem [#allocation5], %s472_s19 }
  0x63   : > { %674 = dma.done.wait (%p936_p9), %s221_s10, 32  }
  0x64   : > { %676 = vsyncadd (%p936_p9), %s221_s10, 4294967264  ;;  %p937_p12 = scmp.ne.s32.totalorder %s930_s20, 0 }
  0x66   : > { %678 = dma.done.wait (%p937_p12), [#allocation4], 16  }
  0x67   : > { %680 = vsyncadd (%p937_p12), [#allocation4], 4294967280 }
  0x68   : > { %233 = sfence }
  0x69   : > { %v265_v0 = vld [vmem:[%s215_s7] sm:$0x3]  ;;  %v474_v1 = vld [vmem:[%s215_s7 + $0x2] sm:$0x3]  ;;  %v475_v3 = vld [vmem:[%s215_s7 + $0x4] sm:$0x3] }
  0x6a   : > { %v268_v2 = vmax.f32 %v265_v0, %v474_v1  ;;  %v476_v4 = vld [vmem:[%s215_s7 + $0x6] sm:$0x3]  ;;  %v264_v21 = vld [vmem:[%s882_s27] sm:$0x3]  ;;  %s282_s20 = sld [smem:[#allocation7]]  ;;  %s477_s21 = sld [smem:[#allocation7 + $0x1]] }
  0x6b   : > { %vm279_vm0 = vcmp.eq.s32.totalorder %v264_v21, 0  ;;  %vm289_vm1 = vcmp.eq.s32.totalorder %v264_v21, 1  ;;  %s478_s25 = sld [smem:[#allocation7 + $0x2]]  ;;  %vm299_vm2 = vcmp.eq.s32.totalorder %v264_v21, 2  ;;  %s479_s5 = sld [smem:[#allocation7 + $0x3]]  ;;  %vm309_vm3 = vcmp.eq.s32.totalorder %v264_v21, 3 }
  0x6c   : > { %v271_v5 = vmax.f32 %v268_v2, %v475_v3  ;;  %v280_v23 = vsel %vm279_vm0, %v265_v0, 0.0  ;;  %vm331_vm4 = vcmask 1041408   ;;  %p258_p7 = scmp.lt.s32.totalorder %s695_s15, 1  ;;  %vm343_vm5 = vcmask 0  }
  0x6d   : > { %v290_v25 = vsel %vm289_vm1, %v474_v1, %v280_v23 }
  0x6e   : > { %v274_v6 = vmax.f32 %v271_v5, %v476_v4  ;;  %v300_v28 = vsel %vm299_vm2, %v475_v3, %v290_v25  ;;  %s946_s15 = smov (!%p258_p7, %s695_s15), 1 }
  0x6f   : > { %v310_v33 = vsel %vm309_vm3, %v476_v4, %v300_v28  ;;  %s263_s12 = scalar_lea.vmem %s925_s3, %s946_s15 }
  0x70   : > { %v275_v7 = vsub.f32 %v265_v0, %v274_v6  ;;  %v285_v8 = vsub.f32 %v474_v1, %v274_v6  ;;  %v295_v9 = vsub.f32 %v475_v3, %v274_v6  ;;  %v305_v10 = vsub.f32 %v476_v4, %v274_v6 }
  0x71   : > { %v283_v26 = vstv %s282_s20  ;;  %v293_v30 = vstv %s477_s21  ;;  %v303_v37 = vstv %s478_s25  ;;  %v320_v40 = vsub.f32 %v310_v33, %v274_v6 }
  0x72   : > { %v276_v11 = vmul.f32 1.442695, %v275_v7  ;;  %v286_v12 = vmul.f32 1.442695, %v285_v8  ;;  %v296_v13 = vmul.f32 1.442695, %v295_v9  ;;  %v313_v42 = vstv %s479_s5 }
  0x73   : > { %v306_v14 = vmul.f32 1.442695, %v305_v10  ;;  %v284_v29 = vsel %vm279_vm0, %v283_v26, 0.0 }
  0x74   : > { %558 = vpow2.f32 %v276_v11  ;;  %v294_v36 = vsel %vm289_vm1, %v293_v30, %v284_v29 }
  0x75   : > { %560 = vpow2.f32 %v286_v12  ;;  %v304_v41 = vsel %vm299_vm2, %v303_v37, %v294_v36 }
  0x76   : > { %562 = vpow2.f32 %v296_v13  ;;  %v314_v46 = vsel %vm309_vm3, %v313_v42, %v304_v41 }
  0x77   : > { %564 = vpow2.f32 %v306_v14  ;;  %v328_v50 = vsub.f32 0.0, %v314_v46 }
  0x7e   : > { %v559_v15 = vpop.eup %558 }
  0x7f   : > { %v561_v16 = vpop.eup %560  ;;  %v281_v24 = vsel %vm279_vm0, %v559_v15, 0.0 }
  0x80   : > { %v563_v17 = vpop.eup %562  ;;  %v288_v18 = vadd.f32 %v561_v16, %v559_v15  ;;  %v291_v27 = vsel %vm289_vm1, %v561_v16, %v281_v24 }
  0x81   : > { %v565_v19 = vpop.eup %564  ;;  %v301_v32 = vsel %vm299_vm2, %v563_v17, %v291_v27 }
  0x82   : > { %v298_v20 = vadd.f32 %v563_v17, %v288_v18  ;;  %v311_v39 = vsel %vm309_vm3, %v565_v19, %v301_v32 }
  0x84   : > { %v308_v22 = vadd.f32 %v565_v19, %v298_v20 }
  0x86   : > { %566 = vrcp.f32 %v308_v22 }
  0x87   : > { %568 = vlog2.f32 %v308_v22 }
  0x90   : > { %v567_v31 = vpop.eup %566 }
  0x91   : > { %v316_v34 = vmul.f32 %v567_v31, %v308_v22  ;;  %v569_v35 = vpop.eup %568 }
  0x92   : > { %v322_v44 = vmul.f32 0.6931472, %v569_v35 }
  0x93   : > { %v317_v38 = vsub.f32 2.0, %v316_v34 }
  0x94   : > { %v323_v47 = vsub.f32 %v320_v40, %v322_v44 }
  0x95   : > { %v318_v43 = vmul.f32 %v567_v31, %v317_v38 }
  0x96   : > { %v324_v51 = vmax.f32 %v323_v47, -23.02585 }
  0x97   : > { %v319_v45 = vmul.f32 %v318_v43, %v311_v39 }
  0x99   : > { %v325_v48 = vsub.f32 1.0, %v319_v45 }
  0x9b   : > { %v326_v49 = vmax.f32 %v325_v48, 0.0 }
  0x9d   : > { %v327_v52 = vmul.f32 %v326_v49, %v326_v49 }
  0x9f   : > { %v329_v53 = vmul.f32 %v328_v50, %v327_v52 }
  0xa1   : > { %v330_v54 = vmul.f32 %v329_v53, %v324_v51 }
  0xa3   : > { %v332_v55 = vsel %vm331_vm4, %v330_v54, 0.0 }
  0xa4   : > { %333 = vadd.xlane.f32.xlu0 %v332_v55 }
 0x131   : > { %v334_v56 = vpop.xlane.xlu0 %333 }
 0x132   : > { %v335_v57 = vrot.slane %v334_v56, 4 }
 0x134   : > { %v336_v58 = vadd.f32 %v335_v57, %v334_v56 }
 0x136   : > { %v337_v59 = vrot.slane %v336_v58, 2 }
 0x138   : > { %v338_v60 = vadd.f32 %v337_v59, %v336_v58 }
 0x13a   : > { %v339_v61 = vrot.slane %v338_v60, 1 }
 0x13c   : > { %v340_v62 = vadd.f32 %v339_v61, %v338_v60 }
 0x13e   : > { %483 = vpush %v340_v62 }
 0x16f   : > { %s484_s18 = spop %483 }
 0x170   : > { %v342_v63 = vstv %s484_s18 }
 0x171   : > { %344 = vst.msk [vmem:[%s263_s12] sm:$0x1] %vm343_vm5, %v342_v63 }
 0x172 PF: > { %s20_s17 = sadd.s32 1, %s703_s17   ;;  %s938_s12 = smov %s687_s13 }
 0x173   : > { %p17_p4 = scmp.ge.s32.totalorder %s20_s17, 4   ;;  %s939_s13 = smov %s691_s14 }
 0x174   : > { %s940_s14 = smov %s846_s23  ;;  %s941_s15 = smov %s699_s16 }
 0x175   : > { %s942_s16 = smov %s944_s30  ;;  %19 = sbr.rel (!%p17_p4) target bundleno = 7 (0x7), region = 93 }
 0x17c   :  { %368 = vsyncpa [#allocation3], 1 }
 0x17d   :  { %370 = vsyncpa [#allocation3 + $0x1], 1 }
 0x17e   :  { %371 = vsyncpa [#allocation6], 1 }
 0x17f   :  { %373 = vsyncpa [#allocation6 + $0x1], 1 }
 0x180   :  { %374 = vsyncpa [#allocation4], 1 }
 0x181   :  { %376 = vsyncpa [#allocation4 + $0x1], 1 }

</bundles_post_ra>
